<compile_context>
chip_gen: v7x
topology: tpu7x:2x2x1
jax: 0.10.0
libtpu: 0.0.40
codegen_flags: <defaults>
</compile_context>

<pallas_src>
import functools
import math

import jax
import jax.numpy as jnp
from jax import lax
from jax.experimental import pallas as pl
from jax.experimental.pallas import tpu as pltpu

EPS2 = 1e-12

# Conservative VMEM accounting: double-buffered in/out blocks + weights + f32 epilogue
# temporaries must stay under the block budget; the compiler limit gets 2x headroom.
_VMEM_BLOCK_BUDGET = 16 * 1024 * 1024
_VMEM_LIMIT_BYTES = 32 * 1024 * 1024
_BLOCK_BYTES_TARGET = 4 * 1024 * 1024     # per-step in+out bytes (HBM roofline knee)


def _round_up(v, m):
    return ((v + m - 1) // m) * m


def _vn_leaky_slabs(p_k, d_k, negative_slope, approx):
    """VN leaky-ReLU epilogue. p_k: 3 x (Cout, n) f32; d_k: 3 x (Cout or 1, n) f32."""
    dot = p_k[0] * d_k[0] + p_k[1] * d_k[1] + p_k[2] * d_k[2]
    dns = d_k[0] * d_k[0] + d_k[1] * d_k[1] + d_k[2] * d_k[2]
    # Reciprocal on the EUP slot (off the VALU path); approx=True opt-in for speed.
    recip = pl.reciprocal(dns + EPS2, approx=approx)
    coeff = jnp.where(dot < 0.0, (1.0 - negative_slope) * dot * recip, 0.0)
    return [p_k[k] - coeff * d_k[k] for k in range(3)]


def _hn_kernel_full(x_ref, w_ref, o_ref, *, bt, cout, cpad, d_rows, npad,
                    negative_slope, approx):
    """Full-3N path. x_ref: (bt, Cin, 3*Npad); w_ref: (rows, Cin); o_ref: (bt, Cout, 3*Npad)."""
    w = w_ref[...]

    def body(b, carry=0):
        # ONE wide MXU pass per batch element: [Wf ; Wd] @ x[b] -> (rows, 3*Npad), f32 acc.
        pd = jnp.dot(w, x_ref[b], preferred_element_type=jnp.float32)
        p = pd[0:cout, :]
        d = pd[cpad:cpad + d_rows, :]            # (Cout, 3N) or (1, 3N) when shared dir
        p_k = [p[:, k * npad:(k + 1) * npad] for k in range(3)]
        d_k = [d[:, k * npad:(k + 1) * npad] for k in range(3)]
        out_k = _vn_leaky_slabs(p_k, d_k, negative_slope, approx)
        if isinstance(b, int):
            # Static batch index: three lane-aligned slab stores (no concat temporary).
            for k in range(3):
                o_ref[b, :, k * npad:(k + 1) * npad] = out_k[k].astype(o_ref.dtype)
        else:
            # Dynamic batch index (large batch blocks): single full-row store.
            o_ref[b] = jnp.concatenate(out_k, axis=-1).astype(o_ref.dtype)
        return carry

    if bt <= 8:
        for b in range(bt):            # short, bounded static loop
            body(b)
    else:
        lax.fori_loop(0, bt, body, 0)  # no giant unroll / unbounded live ranges


def _hn_kernel_ntile(x0_ref, x1_ref, x2_ref, w_ref, o0_ref, o1_ref, o2_ref, *,
                     cout, cpad, d_rows, negative_slope, approx):
    """N-tiled path. xk_ref: (1, Cin, n_tile) for vector component k; ok_ref: (1, Cout, n_tile)."""
    w = w_ref[...]
    p_k, d_k = [], []
    for x_ref in (x0_ref, x1_ref, x2_ref):
        pd = jnp.dot(w, x_ref[0], preferred_element_type=jnp.float32)
        p_k.append(pd[0:cout, :])
        d_k.append(pd[cpad:cpad + d_rows, :])
    out_k = _vn_leaky_slabs(p_k, d_k, negative_slope, approx)
    o0_ref[0] = out_k[0].astype(o0_ref.dtype)
    o1_ref[0] = out_k[1].astype(o1_ref.dtype)
    o2_ref[0] = out_k[2].astype(o2_ref.dtype)


def _step_vmem_bytes(bt, n_tile, cin, cout, rows, x_isize, o_isize, w_bytes):
    """Estimated VMEM per grid step: double-buffered in/out blocks + weights + f32 temps."""
    l3 = 3 * n_tile
    in_b = bt * cin * l3 * x_isize
    out_b = bt * cout * l3 * o_isize
    tmp = (rows * l3 + 7 * cout * n_tile) * 4   # pd + dot/dns/recip/coeff + 3 out slabs
    return 2 * (in_b + out_b) + 2 * w_bytes + tmp


def hn_linear_leaky_relu(x, w_feat, w_dir, *, negative_slope=0.2,
                         batch_block=None, n_tile=None, approx_reciprocal=False):
    """x: [B, Cin, 3, N...]; w_feat: [Cout, Cin]; w_dir: [Cout, Cin] or [1, Cin].

    Returns the vector output x_out: [B, Cout, 3, N...] of HNLinearLeakyReLU
    (s=None, bn=False, apply_leaky_relu=True path).
    """
    assert x.ndim >= 4 and x.shape[2] == 3, "expected [B, Cin, 3, N...]"
    B, cin = x.shape[0], x.shape[1]
    spatial = x.shape[3:]
    n = int(math.prod(spatial))
    cout, cin_f = w_feat.shape
    assert cin_f == cin
    assert w_dir.shape[1] == cin and w_dir.shape[0] in (1, cout)
    shared_dir = (w_dir.shape[0] == 1 and cout > 1)

    # Flatten trailing spatial dims; pad N to a lane-tile multiple so every per-k slice
    # and output store is vreg-aligned / lane-dense.
    x4 = x.reshape(B, cin, 3, n)
    npad = _round_up(max(n, 1), 128)
    if npad != n:
        x4 = jnp.pad(x4, ((0, 0), (0, 0), (0, 0), (0, npad - n)))
    l3 = 3 * npad
    x2 = x4.reshape(B, cin, l3)          # K=3 folded onto the lane axis (free reshape)

    # Stacked [Wf ; Wd] weight; feat rows padded to a sublane multiple.  A shared dir
    # weight keeps a single 8-row block (no Cout-row broadcast); d broadcasts in-kernel.
    cpad = _round_up(cout, 8)
    d_rows = 1 if shared_dir else cout
    d_pad = 8 if shared_dir else cpad
    rows = cpad + d_pad
    w_stacked = jnp.zeros((rows, cin), dtype=w_feat.dtype)
    w_stacked = w_stacked.at[:cout].set(w_feat)
    w_stacked = w_stacked.at[cpad:cpad + d_rows].set(w_dir)
    w_bytes = rows * cin * w_stacked.dtype.itemsize

    x_isize = x.dtype.itemsize
    o_isize = x.dtype.itemsize

    def fits(bt, nt):
        return _step_vmem_bytes(bt, nt, cin, cout, rows, x_isize, o_isize,
                                w_bytes) <= _VMEM_BLOCK_BUDGET

    use_ntile = (n_tile is not None) or (not fits(1, npad))

    if not use_ntile:
        # ----- full-3N path: grid over batch blocks --------------------------------
        if batch_block is None:
            min_steps = min(4, B)        # keep both v7x TCs fed + pipelining
            bt = 1
            for cand in range(1, B + 1):
                if B % cand:
                    continue
                if B // cand < min_steps or not fits(cand, npad):
                    break
                bt = cand
                if cand * (cin + cout) * l3 * x_isize >= _BLOCK_BYTES_TARGET:
                    break
            batch_block = bt
        assert B % batch_block == 0
        grid = (B // batch_block,)

        kernel = functools.partial(
            _hn_kernel_full, bt=batch_block, cout=cout, cpad=cpad, d_rows=d_rows,
            npad=npad, negative_slope=negative_slope, approx=approx_reciprocal)

        out2 = pl.pallas_call(
            kernel,
            out_shape=jax.ShapeDtypeStruct((B, cout, l3), x.dtype),
            grid_spec=pltpu.PrefetchScalarGridSpec(
                num_scalar_prefetch=0,
                grid=grid,
                in_specs=[
                    pl.BlockSpec((batch_block, cin, l3), lambda b: (b, 0, 0)),
                    pl.BlockSpec((rows, cin), lambda b: (0, 0)),
                ],
                out_specs=pl.BlockSpec((batch_block, cout, l3), lambda b: (b, 0, 0)),
            ),
            compiler_params=pltpu.CompilerParams(
                dimension_semantics=("parallel",),
                vmem_limit_bytes=_VMEM_LIMIT_BYTES),
        )(x2, w_stacked)
        out = out2.reshape(B, cout, 3, npad)
    else:
        # ----- N-tiled path (large point clouds / v7x 64 MiB VMEM) -----------------
        if n_tile is None:
            m = npad // 128
            n_tile = 128
            for cand in sorted((128 * d for d in range(1, m + 1) if m % d == 0),
                               reverse=True):
                if fits(1, cand):
                    n_tile = cand
                    break
        assert n_tile % 128 == 0 and npad % n_tile == 0
        ntiles = npad // n_tile
        grid = (B, ntiles)

        kernel = functools.partial(
            _hn_kernel_ntile, cout=cout, cpad=cpad, d_rows=d_rows,
            negative_slope=negative_slope, approx=approx_reciprocal)

        x_specs = [
            pl.BlockSpec((1, cin, n_tile), lambda b, j, k=k: (b, 0, k * ntiles + j))
            for k in range(3)
        ]
        o_spec = pl.BlockSpec((1, cout, n_tile), lambda b, j: (b, 0, j))
        o_shape = jax.ShapeDtypeStruct((B, cout, npad), x.dtype)

        o0, o1, o2 = pl.pallas_call(
            kernel,
            out_shape=(o_shape, o_shape, o_shape),
            grid_spec=pltpu.PrefetchScalarGridSpec(
                num_scalar_prefetch=0,
                grid=grid,
                in_specs=x_specs + [pl.BlockSpec((rows, cin), lambda b, j: (0, 0))],
                out_specs=(o_spec, o_spec, o_spec),
            ),
            compiler_params=pltpu.CompilerParams(
                dimension_semantics=("parallel", "parallel"),
                vmem_limit_bytes=_VMEM_LIMIT_BYTES),
        )(x2, x2, x2, w_stacked)
        out = jnp.stack([o0, o1, o2], axis=2)     # [B, Cout, 3, Npad]

    if npad != n:
        out = out[..., :n]
    return out.reshape(B, cout, 3, *spatial)


def hn_linear_leaky_relu_ref(x, w_feat, w_dir, negative_slope=0.2):
    # Pure-JAX reference mirroring the PyTorch forward (full f32 matmuls).
    hp = jax.lax.Precision.HIGHEST
    p = jnp.einsum('oc,bckn->bokn', w_feat, x, precision=hp)
    d = jnp.einsum('oc,bckn->bokn', w_dir, x, precision=hp)
    dnsq = jnp.sum(d * d, axis=2, keepdims=True)
    dot = jnp.sum(p * d, axis=2, keepdims=True)
    mask = (dot < 0).astype(x.dtype)
    return p - mask * (1.0 - negative_slope) * (dot / (dnsq + EPS2)) * d


if __name__ == "__main__":
    B, Cin, Cout, N = 2, 8, 8, 16
    key = jax.random.PRNGKey(0)
    kx, kf, kd, ks, kx2 = jax.random.split(key, 5)
    x = jax.random.normal(kx, (B, Cin, 3, N), dtype=jnp.float32)
    bound = 1.0 / (Cin ** 0.5)
    w_feat = jax.random.uniform(kf, (Cout, Cin), minval=-bound, maxval=bound,
                                dtype=jnp.float32)
    w_dir = jax.random.uniform(kd, (Cout, Cin), minval=-bound, maxval=bound,
                               dtype=jnp.float32)

    # 1) Separate map_to_dir weights (share_nonlinearity=False), full-3N path.
    out = jax.block_until_ready(hn_linear_leaky_relu(x, w_feat, w_dir))
    ref = hn_linear_leaky_relu_ref(x, w_feat, w_dir)
    assert out.shape == (B, Cout, 3, N)
    assert jnp.allclose(out, ref, atol=1e-3, rtol=1e-3), \
        "mismatch vs reference (separate dir weights)"

    # 2) Shared map_to_dir weight (share_nonlinearity=True): Wd is [1, Cin].
    w_dir_shared = jax.random.uniform(ks, (1, Cin), minval=-bound, maxval=bound,
                                      dtype=jnp.float32)
    out_s = jax.block_until_ready(hn_linear_leaky_relu(x, w_feat, w_dir_shared))
    ref_s = hn_linear_leaky_relu_ref(x, w_feat, w_dir_shared)
    assert jnp.allclose(out_s, ref_s, atol=1e-3, rtol=1e-3), \
        "mismatch vs reference (shared dir weight)"

    # 3) Force the N-tiled fallback path (large point clouds / v7x VMEM) at a small shape.
    x_big = jax.random.normal(kx2, (B, Cin, 3, 256), dtype=jnp.float32)
    out_t = jax.block_until_ready(hn_linear_leaky_relu(x_big, w_feat, w_dir, n_tile=128))
    ref_t = hn_linear_leaky_relu_ref(x_big, w_feat, w_dir)
    assert out_t.shape == (B, Cout, 3, 256)
    assert jnp.allclose(out_t, ref_t, atol=1e-3, rtol=1e-3), \
        "mismatch vs reference (N-tiled path)"

    print("KERNEL_OK")
</pallas_src>

<mosaic_0001>
module attributes {stable_mosaic.version = 11 : i64} {
  func.func @_hn_kernel_full(%arg0: i32, %arg1: memref<1x8x384xf32, #tpu.memory_space<vmem>>, %arg2: memref<16x8xf32, #tpu.memory_space<vmem>>, %arg3: memref<1x8x384xf32, #tpu.memory_space<vmem>>) attributes {dimension_semantics = [#tpu.dimension_semantics<parallel>], iteration_bounds = array<i64: 2>, scalar_prefetch = 0 : i64, scratch_operands = 0 : i64, tpu.core_type = #tpu.core_type<tc>, window_params = [{transform_indices = @transform_0, window_bounds = array<i64: 1, 8, 384>}, {pipeline_mode = #tpu.pipeline_mode<synchronous>, transform_indices = @transform_1, window_bounds = array<i64: 16, 8>}, {transform_indices = @transform_2, window_bounds = array<i64: 1, 8, 384>}]} {
    %c0 = arith.constant 0 : index
    %c0_0 = arith.constant 0 : index
    %0 = vector.load %arg2[%c0, %c0_0] : memref<16x8xf32, #tpu.memory_space<vmem>>, vector<16x8xf32>
    %c0_1 = arith.constant 0 : index
    %c0_2 = arith.constant 0 : index
    %c0_3 = arith.constant 0 : index
    %1 = vector.load %arg1[%c0_1, %c0_2, %c0_3] : memref<1x8x384xf32, #tpu.memory_space<vmem>>, vector<1x8x384xf32>
    %2 = vector.shape_cast %1 : vector<1x8x384xf32> to vector<8x384xf32>
    %cst = arith.constant dense<0.000000e+00> : vector<16x384xf32>
    %3 = tpu.matmul %0, %2, %cst {dimension_numbers = #tpu.dot_dimension_numbers<[1], [0], [0], [1], [0, 0, 1, 1], [], []>} : vector<16x8xf32>, vector<8x384xf32>, vector<16x384xf32> -> vector<16x384xf32>
    %4 = vector.extract_strided_slice %3 {offsets = [0, 0], sizes = [8, 384], strides = [1, 1]} : vector<16x384xf32> to vector<8x384xf32>
    %5 = vector.extract_strided_slice %3 {offsets = [8, 0], sizes = [8, 384], strides = [1, 1]} : vector<16x384xf32> to vector<8x384xf32>
    %6 = vector.extract_strided_slice %4 {offsets = [0, 0], sizes = [8, 128], strides = [1, 1]} : vector<8x384xf32> to vector<8x128xf32>
    %7 = vector.extract_strided_slice %4 {offsets = [0, 128], sizes = [8, 128], strides = [1, 1]} : vector<8x384xf32> to vector<8x128xf32>
    %8 = vector.extract_strided_slice %4 {offsets = [0, 256], sizes = [8, 128], strides = [1, 1]} : vector<8x384xf32> to vector<8x128xf32>
    %9 = vector.extract_strided_slice %5 {offsets = [0, 0], sizes = [8, 128], strides = [1, 1]} : vector<8x384xf32> to vector<8x128xf32>
    %10 = vector.extract_strided_slice %5 {offsets = [0, 128], sizes = [8, 128], strides = [1, 1]} : vector<8x384xf32> to vector<8x128xf32>
    %11 = vector.extract_strided_slice %5 {offsets = [0, 256], sizes = [8, 128], strides = [1, 1]} : vector<8x384xf32> to vector<8x128xf32>
    %12 = arith.mulf %6, %9 : vector<8x128xf32>
    %13 = arith.mulf %7, %10 : vector<8x128xf32>
    %14 = arith.addf %12, %13 : vector<8x128xf32>
    %15 = arith.mulf %8, %11 : vector<8x128xf32>
    %16 = arith.addf %14, %15 : vector<8x128xf32>
    %17 = arith.mulf %9, %9 : vector<8x128xf32>
    %18 = arith.mulf %10, %10 : vector<8x128xf32>
    %19 = arith.addf %17, %18 : vector<8x128xf32>
    %20 = arith.mulf %11, %11 : vector<8x128xf32>
    %21 = arith.addf %19, %20 : vector<8x128xf32>
    %cst_4 = arith.constant 9.99999996E-13 : f32
    %22 = vector.broadcast %cst_4 : f32 to vector<8x128xf32>
    %23 = arith.addf %21, %22 : vector<8x128xf32>
    %24 = tpu.reciprocal %23 : vector<8x128xf32> -> vector<8x128xf32>
    %cst_5 = arith.constant 0.000000e+00 : f32
    %25 = vector.broadcast %cst_5 : f32 to vector<8x128xf32>
    %26 = arith.cmpf olt, %16, %25 : vector<8x128xf32>
    %cst_6 = arith.constant 8.000000e-01 : f32
    %27 = vector.broadcast %cst_6 : f32 to vector<8x128xf32>
    %28 = arith.mulf %27, %16 : vector<8x128xf32>
    %29 = arith.mulf %28, %24 : vector<8x128xf32>
    %cst_7 = arith.constant 0.000000e+00 : f32
    %30 = vector.broadcast %cst_7 : f32 to vector<8x128xf32>
    %31 = arith.select %26, %29, %30 : vector<8x128xi1>, vector<8x128xf32>
    %32 = arith.mulf %31, %9 : vector<8x128xf32>
    %33 = arith.subf %6, %32 : vector<8x128xf32>
    %34 = arith.mulf %31, %10 : vector<8x128xf32>
    %35 = arith.subf %7, %34 : vector<8x128xf32>
    %36 = arith.mulf %31, %11 : vector<8x128xf32>
    %37 = arith.subf %8, %36 : vector<8x128xf32>
    %c0_8 = arith.constant 0 : index
    %c0_9 = arith.constant 0 : index
    %c0_10 = arith.constant 0 : index
    %38 = vector.load %arg3[%c0_8, %c0_9, %c0_10] : memref<1x8x384xf32, #tpu.memory_space<vmem>>, vector<1x8x128xf32>
    %39 = vector.shape_cast %38 : vector<1x8x128xf32> to vector<8x128xf32>
    %40 = vector.shape_cast %33 : vector<8x128xf32> to vector<1x8x128xf32>
    tpu.vector_store %arg3[%c0_8, %c0_9, %c0_10], %40 {strides = array<i32>} : memref<1x8x384xf32, #tpu.memory_space<vmem>>, vector<1x8x128xf32>,
    %c0_11 = arith.constant 0 : index
    %c0_12 = arith.constant 0 : index
    %c128 = arith.constant 128 : index
    %41 = vector.load %arg3[%c0_11, %c0_12, %c128] : memref<1x8x384xf32, #tpu.memory_space<vmem>>, vector<1x8x128xf32>
    %42 = vector.shape_cast %41 : vector<1x8x128xf32> to vector<8x128xf32>
    %43 = vector.shape_cast %35 : vector<8x128xf32> to vector<1x8x128xf32>
    tpu.vector_store %arg3[%c0_11, %c0_12, %c128], %43 {strides = array<i32>} : memref<1x8x384xf32, #tpu.memory_space<vmem>>, vector<1x8x128xf32>,
    %c0_13 = arith.constant 0 : index
    %c0_14 = arith.constant 0 : index
    %c256 = arith.constant 256 : index
    %44 = vector.load %arg3[%c0_13, %c0_14, %c256] : memref<1x8x384xf32, #tpu.memory_space<vmem>>, vector<1x8x128xf32>
    %45 = vector.shape_cast %44 : vector<1x8x128xf32> to vector<8x128xf32>
    %46 = vector.shape_cast %37 : vector<8x128xf32> to vector<1x8x128xf32>
    tpu.vector_store %arg3[%c0_13, %c0_14, %c256], %46 {strides = array<i32>} : memref<1x8x384xf32, #tpu.memory_space<vmem>>, vector<1x8x128xf32>,
    return
  }
  func.func @transform_0(%arg0: i32) -> (i32, i32, i32) {
    %c0_i32 = arith.constant 0 : i32
    %c0_i32_0 = arith.constant 0 : i32
    %c0_i32_1 = arith.constant 0 : i32
    return %arg0, %c0_i32, %c0_i32_0 : i32, i32, i32
  }
  func.func @transform_1(%arg0: i32) -> (i32, i32) {
    %c0_i32 = arith.constant 0 : i32
    %c0_i32_0 = arith.constant 0 : i32
    %c0_i32_1 = arith.constant 0 : i32
    return %c0_i32, %c0_i32_0 : i32, i32
  }
  func.func @transform_2(%arg0: i32) -> (i32, i32, i32) {
    %c0_i32 = arith.constant 0 : i32
    %c0_i32_0 = arith.constant 0 : i32
    %c0_i32_1 = arith.constant 0 : i32
    return %arg0, %c0_i32, %c0_i32_0 : i32, i32, i32
  }
}

</mosaic_0001>

<bundles_post_ra>
// kernel: tpu_custom_call.1
= control target key start
LH: loop header
LB: loop body
LE: loop exit
PB: predicated region body
PF: predicated region fallthrough
CT: control target
= control target key end

     0   :  { %7 = vsyncpa [#allocation3], 0  ;;  %s788_s0 = inlined_call_operand.hbm [shape: f32[2,8,384], index: 0, kind: input, shape index: {}]   ;;  %s789_s1 = inlined_call_operand.vmem [shape: f32[16,8], index: 1, kind: input, shape index: {}]   ;;  %s790_s2 = inlined_call_operand.hbm [shape: f32[2,8,384], index: 2, kind: output, shape index: {}]  }
   0x1   :  { %9 = vsyncpa [#allocation3 + $0x1], 0 }
   0x2   :  { %10 = vsyncpa [#allocation4], 0 }
   0x3   :  { %12 = vsyncpa [#allocation4 + $0x1], 0  ;;  %s623_s9 = smov 0   ;;  %s625_s10 = smov 0  }
   0x4   :  { %s627_s11 = smov 0   ;;  %s629_s12 = smov 0  }
   0x5 LB: > { %s644_s13 = sadd.s32 4294967295, %s603_s12   ;;  %s434_s14 = sadd.s32 4294967294, %s603_s12   ;;  %s603_s12 = sphi %s629_s12, %s804_s12   ;;  %s599_s11 = sphi %s627_s11, %s803_s11   ;;  %s595_s10 = sphi %s625_s10, %s802_s10   ;;  %s591_s9 = sphi %s623_s9, %s801_s9  }
   0x6   : > { %s648_s15 = sadd.s32 1, %s603_s12   ;;  %s25_s16 = sadd.s32 1, %s599_s11 }
   0x7   : > { %s22_s17 = ssub.s32 %s603_s12, %s648_s15  ;;  %p32_p0 = scmp.ne.s32.totalorder %s599_s11, %s595_s10 }
   0x8   : > { %p23_p1 = scmp.eq.s32.totalorder %s22_s17, 0  ;;  %p33_p2 = scmp.eq.s32.totalorder %s603_s12, 0 }
   0x9   : > { %p38_p3 = scmp.ne.s32.totalorder %s595_s10, %s591_s9  ;;  %p39_p4 = scmp.eq.s32.totalorder %s644_s13, 0 }
   0xa   : > { %s660_s18 = scalar_select %p23_p1, %s599_s11, %s25_s16  }
   0xb   : > { %p34_p5 = por %p33_p2, %p32_p0  ;;  %p662_p6 = por %p39_p4, %p38_p3 }
   0xc   : > { %p83_p7 = scmp.eq.s32.totalorder %s644_s13, 1  ;;  %p89_p8 = scmp.eq.s32.totalorder %s434_s14, 1 }
   0xd   : > { %p470_p10 = scmp.lt.s32.totalorder %s603_s12, 2  ;;  %s112_s22 = sand.u32 1, %s599_s11  }
   0xe   : > { %p669_p11 = por %p83_p7, %p32_p0  ;;  %p673_p12 = por %p89_p8, %p38_p3 }
   0xf   : > { %s455_s23 = smul.u32 384, %s603_s12  ;;  %p684_p13 = pnand %p470_p10, %p34_p5 }
  0x10   : > { %s793_s20 = scalar_select %p669_p11, 1, 0 }
  0x11   : > { %s794_s21 = scalar_select %p673_p12, 1, 0 }
  0x12   : > { %s454_s24 = smul.u32 24, %s112_s22  ;;  %s682_s27 = scalar_lea.hbm %s788_s0, %s455_s23 }
  0x13   : > { %s113_s3 = scalar_lea.sflag [#allocation3], %s112_s22  ;;  %s507_s4 = scalar_lea.hbm %s682_s27, 384 }
  0x14   : > { %s116_s29 = scalar_lea.vmem [#allocation2], %s454_s24  ;;  %p508_p2 = scmp.ne.s32.totalorder %s682_s27, %s507_s4 }
  0x15   : > { %s124_s30 = sshll.u32 %s116_s29, 4  ;;  %p509_p3 = pneg %p684_p13  ;;  %s689_s30 = int_to_ptr.vmem [resolvable:$true] %s124_s30 }
  0x16   : > { %s512_s7 = scalar_lea.hbm %s788_s0, 768  ;;  %p513_p7 = scmp.lt.u32.totalorder %s682_s27, %s788_s0 }
  0x17   : > { %p510_p4 = pnand %p509_p3, %p508_p2  ;;  %p514_p8 = scmp.lt.u32.totalorder %s512_s7, %s507_s4 }
  0x18   : > { %p516_p9 = scmp.lt.u32.totalorder %s507_s4, %s682_s27 }
  0x19   : > { %p511_p5 = pneg %p510_p4  ;;  %p515_p10 = por %p514_p8, %p513_p7 }
  0x1b   : > { %p517_p0 = por %p516_p9, %p515_p10 }
  0x1d   : > { %p518_p1 = pnand %p517_p0, %p511_p5 }
  0x1f   : > { %521 = shalt.err (!%p518_p1)
}
  0x20   : > { %s522_s16 = scalar_lea.vmem %s689_s30, 384  ;;  %s605_s17 = smov [#allocation2]  }
  0x21   : > { %p523_p2 = scmp.ne.s32.totalorder %s689_s30, %s522_s16  ;;  %s527_s22 = sshll.u32 %s605_s17, 4  ;;  %s528_s22 = int_to_ptr.vmem [resolvable:$false] %s527_s22 }
  0x22   : > { %s529_s23 = scalar_lea.vmem %s528_s22, 768  ;;  %p530_p11 = scmp.lt.s32.totalorder %s689_s30, %s528_s22 }
  0x23   : > { %p525_p4 = pnand %p523_p2, %p509_p3  ;;  %p531_p7 = scmp.lt.s32.totalorder %s529_s23, %s522_s16 }
  0x25   : > { %p526_p12 = pneg %p525_p4  ;;  %p532_p8 = por %p531_p7, %p530_p11 }
  0x27   : > { %p533_p9 = pnand %p532_p8, %p526_p12 }
  0x29   : > { %536 = shalt.err (!%p533_p9)
}
  0x2a   : > { %465 = dma.hbm_to_vmem [thread:$0]  (!%p684_p13), %s682_s27, 384, %s689_s30, %s113_s3  }
  0x2b   : > { %p796_p0 = scmp.lt.s32.totalorder %s603_s12, 3  ;;  %p797_p1 = scmp.ge.s32.totalorder %s603_s12, 1 }
  0x2d   : > { %p130_p3 = pnand %p797_p1, %p796_p0 }
  0x2e   : > { %s722_s24 = sand.u32 (!%p130_p3), 1, %s595_s10  }
  0x2f   : > { %133 = sbr.rel (%p130_p3) target bundleno = 316 (0x13c), region = 28  ;;  %s136_s26 = scalar_lea.sflag (!%p130_p3), [#allocation3], %s722_s24 }
  0x30   : > { %s456_s25 = smul.u32 (!%p130_p3), 24, %s722_s24 }
  0x32   : > { %s139_s28 = scalar_lea.vmem (!%p130_p3), [#allocation2], %s456_s25 }
  0x36   : > { %582 = dma.done.wait (%p662_p6), %s136_s26, 384  }
  0x37   : > { %584 = vsyncadd (%p662_p6), %s136_s26, 4294966912  ;;  %v606_v0 = vmov 0.0   ;;  %v163_v1 = vld [vmem:[%s139_s28 + $0x8] sm:$0xff]  ;;  %v162_v2 = vld [vmem:[%s139_s28] sm:$0xff]  ;;  %vm165_vm0 = vcmask 64512   ;;  %s457_s19 = smul.u32 384, %s644_s13 }
  0x38   : > { %236 = vmatprep.mubr.f32.mxu0 %v606_v0  ;;  %v160_v3 = vld [vmem:[%s789_s1] sm:$0xff]  ;;  %172 = vmatprep.subr.mxu0 %v163_v1  ;;  %v164_v4 = vld [vmem:[%s139_s28 + $0x10] sm:$0xff]  ;;  %s159_s4 = scalar_lea.vmem [#allocation5], %s456_s25  ;;  %s350_s13 = scalar_lea.sflag [#allocation4], %s722_s24 }
  0x39   : > { %451 = vmatprep.mubr.msk.f32.mxu1 %vm165_vm0, %v160_v3  ;;  %173 = vmatpush1.msra.mxu0 %v162_v2  ;;  %v161_v5 = vld [vmem:[%s789_s1 + $0x8] sm:$0xff]  ;;  %s364_s5 = sshll.u32 %s159_s4, 4  ;;  %s744_s8 = scalar_lea.hbm %s790_s2, %s457_s19  ;;  %s746_s5 = int_to_ptr.vmem [resolvable:$true] %s364_s5 }
  0x3a   : > { %449 = vmatprep.subr.mxu1 %v164_v4  ;;  %439 = vmatmul.mubr.msk.f32.vlgmr.msra.gmra.mrb[0].mxu0 %vm165_vm0, %v160_v3  ;;  %s537_s14 = scalar_lea.vmem %s746_s5, 384  ;;  %p798_p11 = scmp.ne.s32.totalorder %s793_s20, 0 }
  0x3b   : > { %450 = vmatpush3.msra.mxu1 %v164_v4  ;;  %242 = vmatprep.mubr.f32.mxu0 %v606_v0  ;;  %p538_p6 = scmp.ne.s32.totalorder %s746_s5, %s537_s14  ;;  %s607_s16 = smov [#allocation5]  }
  0x3c   : > { %452 = vmatmul.mubr.msk.f32.vlgmr.msra.gmra.mrb[0].mxu1 %vm165_vm0, %v161_v5  ;;  %s541_s17 = sshll.u32 %s607_s16, 4  ;;  %s542_s17 = int_to_ptr.vmem [resolvable:$false] %s541_s17 }
  0x3d   : > { %p539_p12 = pnand %p538_p6, %p798_p11  ;;  %s543_s22 = scalar_lea.vmem %s542_s17, 768 }
  0x3e   : > { %440 = vmatmul.mubr.msk.f32.gmra.mrb[2].mxu0 %vm165_vm0, %v161_v5  ;;  %p544_p5 = scmp.lt.s32.totalorder %s746_s5, %s542_s17  ;;  %p545_p10 = scmp.lt.s32.totalorder %s543_s22, %s537_s14 }
  0x3f   : > { %p540_p13 = pneg %p539_p12 }
  0x40   : > { %p546_p2 = por %p545_p10, %p544_p5 }
  0x42   : > { %p547_p4 = pnand %p546_p2, %p540_p13 }
 0x10d   : > { %v238_v6 = vpop.f32.mrb[0].mxu0 }
 0x10e   : > { %v240_v7 = vpop.f32.mrb[1].mxu0 }
 0x10f   : > { %v453_v8 = vpop.f32.mrb[0].mxu1 }
 0x110   : > { %v315_v9 = vpop.f32.mrb[1].mxu1  ;;  %v332_v17 = vmul.f32 %v453_v8, %v453_v8 }
 0x111   : > { %v327_v10 = vmul.f32 %v453_v8, %v315_v9  ;;  %v244_v11 = vpop.f32.mrb[2].mxu0 }
 0x112   : > { %v324_v12 = vmul.f32 %v244_v11, %v238_v6  ;;  %v329_v13 = vmul.f32 %v244_v11, %v244_v11  ;;  %v246_v14 = vpop.f32.mrb[3].mxu0 }
 0x113   : > { %v325_v15 = vmul.f32 %v246_v14, %v240_v7  ;;  %v330_v16 = vmul.f32 %v246_v14, %v246_v14 }
 0x115   : > { %v326_v18 = vadd.f32 %v325_v15, %v324_v12  ;;  %v331_v19 = vadd.f32 %v330_v16, %v329_v13 }
 0x117   : > { %v333_v20 = vadd.f32 %v332_v17, %v331_v19  ;;  %v328_v21 = vadd.f32 %v327_v10, %v326_v18 }
 0x119   : > { %v334_v22 = vadd.f32 1e-12, %v333_v20  ;;  %v337_v23 = vmul.f32 0.8, %v328_v21  ;;  %vm336_vm1 = vcmp.lt.f32.partialorder %v328_v21, 0.0 }
 0x11b   : > { %505 = vrcp.f32 %v334_v22 }
 0x125   : > { %v506_v24 = vpop.eup %505 }
 0x126   : > { %v338_v25 = vmul.f32 %v506_v24, %v337_v23 }
 0x128   : > { %v339_v26 = vsel %vm336_vm1, %v338_v25, 0.0 }
 0x129   : > { %v340_v27 = vmul.f32 %v339_v26, %v244_v11  ;;  %v342_v28 = vmul.f32 %v339_v26, %v246_v14  ;;  %v344_v29 = vmul.f32 %v453_v8, %v339_v26 }
 0x12b   : > { %v341_v30 = vsub.f32 %v238_v6, %v340_v27  ;;  %v343_v31 = vsub.f32 %v240_v7, %v342_v28  ;;  %v345_v32 = vsub.f32 %v315_v9, %v344_v29 }
 0x12d   : > { %348 = vst [vmem:[%s159_s4 + $0x10] sm:$0xff] %v345_v32  ;;  %346 = vst [vmem:[%s159_s4] sm:$0xff] %v341_v30 }
 0x12e   : > { %347 = vst [vmem:[%s159_s4 + $0x8] sm:$0xff] %v343_v31 }
 0x12f   : > { %550 = shalt.err (!%p547_p4)
}
 0x130   : > { %s551_s23 = scalar_lea.hbm %s744_s8, 384  ;;  %s555_s26 = scalar_lea.hbm %s790_s2, 768 }
 0x131   : > { %p552_p7 = scmp.ne.s32.totalorder %s744_s8, %s551_s23  ;;  %p556_p0 = scmp.lt.u32.totalorder %s744_s8, %s790_s2 }
 0x132   : > { %p557_p1 = scmp.lt.u32.totalorder %s555_s26, %s551_s23  ;;  %p559_p6 = scmp.lt.u32.totalorder %s551_s23, %s744_s8 }
 0x133   : > { %p553_p8 = pnand %p552_p7, %p798_p11 }
 0x134   : > { %p558_p3 = por %p557_p1, %p556_p0 }
 0x135   : > { %p554_p9 = pneg %p553_p8 }
 0x136   : > { %p560_p12 = por %p559_p6, %p558_p3 }
 0x138   : > { %p561_p13 = pnand %p560_p12, %p554_p9 }
 0x13a   : > { %564 = shalt.err (!%p561_p13)
}
 0x13b   : > { %460 = dma.vmem_to_hbm [thread:$0]  (%p798_p11), %s746_s5, 384, %s744_s8, %s350_s13  }
 0x13c PF: > { %s376_s29 = sand.u32 1, %s591_s9   ;;  %p799_p5 = scmp.ne.s32.totalorder %s794_s21, 0 }
 0x13d   : > { %p800_p10 = scmp.ge.s32.totalorder %s603_s12, 2  ;;  %s377_s30 = scalar_lea.sflag [#allocation4], %s376_s29 }
 0x13f   : > { %p467_p2 = pnand %p800_p10, %p799_p5 }
 0x141   : > { %586 = dma.done.wait (!%p467_p2), %s377_s30, 384  }
 0x142   : > { %588 = vsyncadd (!%p467_p2), %s377_s30, 4294966912  ;;  %p15_p4 = scmp.ge.s32.totalorder %s648_s15, 4   ;;  %s801_s9 = smov %s595_s10 }
 0x143   : > { %s802_s10 = smov %s599_s11  ;;  %s803_s11 = smov %s660_s18 }
 0x144   : > { %s804_s12 = smov %s648_s15  ;;  %17 = sbr.rel (!%p15_p4) target bundleno = 5 (0x5), region = 73 }
 0x14b   :  { %382 = vsyncpa [#allocation3], 1 }
 0x14c   :  { %384 = vsyncpa [#allocation3 + $0x1], 1 }
 0x14d   :  { %385 = vsyncpa [#allocation4], 1 }
 0x14e   :  { %387 = vsyncpa [#allocation4 + $0x1], 1 }

</bundles_post_ra>
